<compile_context>
chip_gen: v7x
topology: tpu7x:2x2x1
jax: 0.10.0
libtpu: 0.0.40
codegen_flags: <defaults>
</compile_context>

<pallas_src>
import jax
import jax.numpy as jnp
from jax.experimental import pallas as pl
from jax.experimental.pallas import tpu as pltpu

_LANE = 128
_SUBLANE = 8
_GRANULE = _LANE * _SUBLANE  # 1024 elements: kernel bulk alignment


def _round_up(x: int, mult: int) -> int:
    return ((x + mult - 1) // mult) * mult


def _cdiv(a: int, b: int) -> int:
    return -(-a // b)


def _make_partial_kernel(rows: int, steps: int, tm: int, need_mask: bool):
    """Per-split sum-of-squared-diffs kernel.

    Grid: (n_splits, steps).  The (8, 128) output block index depends only on
    the split id, so it stays resident in VMEM across the inner ("arbitrary")
    reduction axis and the per-step body is pure VPU work.
    """

    def kernel(yt_ref, yp_ref, o_ref):
        p = pl.program_id(0)
        i = pl.program_id(1)

        @pl.when(i == 0)
        def _():
            o_ref[...] = jnp.zeros_like(o_ref)

        diff = yt_ref[...].astype(jnp.float32) - yp_ref[...].astype(jnp.float32)
        sq = diff * diff
        if need_mask:
            # The last (and any excess, index-clamped) block may hold rows past
            # the true row count; zero them before accumulating.  `rows` is a
            # trace-time constant, so no scalar prefetch is needed.
            base = (p * steps + i) * tm
            row_id = base + jax.lax.broadcasted_iota(jnp.int32, (tm, 1), 0)
            sq = jnp.where(row_id < rows, sq, 0.0)
        # Fold (tm, 128) into an (8, 128) vreg-shaped partial sum.  The reshape
        # splits the sublane axis exactly on (8, 128) tile boundaries (free);
        # the axis-0 sum is vreg-wise VPU adds, no XLU cross-lane reduce.
        o_ref[...] += jnp.sum(sq.reshape(tm // _SUBLANE, _SUBLANE, _LANE), axis=0)

    return kernel


def rmse_loss(y_true: jax.Array, y_pred: jax.Array, *, tile_rows: int = 8192,
              n_splits: int = 1, core_split: bool = False) -> jax.Array:
    """sqrt(mean((y_true - y_pred)**2)), matching torch RMSELoss semantics.

    tile_rows:  rows of 128 lanes per grid step.  8192 = 4 MiB/input/block for
                f32 (16 MiB double-buffered) -> amortizes per-step overhead and
                fits every TPU generation with the explicit VMEM limit below.
    n_splits /  On v7x pass n_splits=2, core_split=True to shard the reduction
    core_split: across both TensorCores (CORE_PARALLEL).  Keep the default
                n_splits=1 on single-core chips (v5e / v6e).
    """
    assert y_true.shape == y_pred.shape, (y_true.shape, y_pred.shape)
    n = int(y_true.size)
    assert n > 0
    out_dtype = jnp.result_type(y_true.dtype, y_pred.dtype)
    itemsize = max(jnp.dtype(y_true.dtype).itemsize, jnp.dtype(y_pred.dtype).itemsize)

    yt = jnp.ravel(y_true)
    yp = jnp.ravel(y_pred)

    # Bulk = largest 1024-aligned prefix -> lane-dense (rows, 128) slab via a
    # free reshape when aligned.  Tail (< 1024 elements) is summed in plain
    # JAX; it never forces a padding copy of the whole array.
    n_bulk = (n // _GRANULE) * _GRANULE
    rows = n_bulk // _LANE

    total = jnp.zeros((), jnp.float32)

    if n_bulk < n:
        td = yt[n_bulk:].astype(jnp.float32) - yp[n_bulk:].astype(jnp.float32)
        total = total + jnp.sum(td * td)

    if rows > 0:
        if n_bulk < n:
            yt_b = yt[:n_bulk]   # prefix slice of a contiguous ravel (bulk only)
            yp_b = yp[:n_bulk]
        else:
            yt_b, yp_b = yt, yp  # fully aligned: zero extra copies
        yt2 = yt_b.reshape(rows, _LANE)
        yp2 = yp_b.reshape(rows, _LANE)

        # Row tile: large (kernel is HBM-bandwidth bound), multiple of 8, no
        # larger than the slab, capped so 2 inputs x 2 pipeline buffers stay
        # well under the VMEM limit.
        cap_rows = max(_SUBLANE,
                       (((24 << 20) // (4 * _LANE * itemsize)) // _SUBLANE) * _SUBLANE)
        tm = min(_round_up(max(tile_rows, 1), _SUBLANE), rows, cap_rows)
        tm = max(tm, _SUBLANE)

        blocks = _cdiv(rows, tm)
        splits = n_splits if 1 <= n_splits <= blocks else 1
        steps = _cdiv(blocks, splits)
        need_mask = (splits * steps * tm) != rows

        if splits * steps == blocks:
            in_map = lambda p, i: (p * steps + i, 0)
        else:
            # Excess grid points (uneven split) re-read the last real block;
            # their contribution is masked to zero in-kernel.
            last = blocks - 1
            in_map = lambda p, i: (jnp.minimum(p * steps + i, last), 0)

        if core_split and splits > 1:
            dim_sems = (pltpu.CORE_PARALLEL, pltpu.ARBITRARY)
        else:
            dim_sems = ("parallel", "arbitrary")

        block_bytes = tm * _LANE * itemsize
        partial = pl.pallas_call(
            _make_partial_kernel(rows, steps, tm, need_mask),
            out_shape=jax.ShapeDtypeStruct((splits * _SUBLANE, _LANE), jnp.float32),
            grid_spec=pltpu.PrefetchScalarGridSpec(
                num_scalar_prefetch=0,
                grid=(splits, steps),
                in_specs=[pl.BlockSpec((tm, _LANE), in_map),
                          pl.BlockSpec((tm, _LANE), in_map)],
                out_specs=pl.BlockSpec((_SUBLANE, _LANE), lambda p, i: (p, 0)),
            ),
            compiler_params=pltpu.CompilerParams(
                dimension_semantics=dim_sems,
                vmem_limit_bytes=max(32 << 20, 4 * block_bytes + (4 << 20)),
            ),
            cost_estimate=pl.CostEstimate(
                flops=3 * n_bulk,
                transcendentals=0,
                bytes_accessed=2 * n_bulk * itemsize + splits * _SUBLANE * _LANE * 4,
            ),
        )(yt2, yp2)
        total = total + jnp.sum(partial)

    # Divide by the TRUE element count and sqrt; match input dtype like torch.
    return jnp.sqrt(total / jnp.float32(n)).astype(out_dtype)


if __name__ == "__main__":
    key = jax.random.PRNGKey(0)
    k1, k2, k3, k4, k5, k6 = jax.random.split(key, 6)

    def ref_rmse(a, b):
        d = a.astype(jnp.float32) - b.astype(jnp.float32)
        return jnp.sqrt(jnp.mean(d * d))

    # 1) NCHW-style input (n = 2048, 1024-aligned): fully copy-free path.
    shape = (2, 4, 16, 16)
    a = jax.random.normal(k1, shape, dtype=jnp.float32)
    b = jax.random.normal(k2, shape, dtype=jnp.float32)
    out = jax.block_until_ready(rmse_loss(a, b))
    ref = ref_rmse(a, b)
    assert jnp.allclose(out, ref, atol=1e-5, rtol=1e-5), (out, ref)

    # 2) Tiny ragged size (< one 1024-element granule): wrapper tail path.
    a2 = jax.random.normal(k3, (3, 5, 7), dtype=jnp.float32)
    b2 = jax.random.normal(k4, (3, 5, 7), dtype=jnp.float32)
    out2 = jax.block_until_ready(rmse_loss(a2, b2))
    ref2 = ref_rmse(a2, b2)
    assert jnp.allclose(out2, ref2, atol=1e-5, rtol=1e-5), (out2, ref2)

    # 3) Row count not a multiple of the tile + uneven 2-way split: exercises
    #    the in-kernel tail mask and the clamped index map (safe "parallel"
    #    semantics on every generation; CORE_PARALLEL stays opt-in for v7x).
    a3 = jax.random.normal(k5, (40, 128), dtype=jnp.float32)
    b3 = jax.random.normal(k6, (40, 128), dtype=jnp.float32)
    out3 = jax.block_until_ready(rmse_loss(a3, b3, tile_rows=16, n_splits=2))
    ref3 = ref_rmse(a3, b3)
    assert jnp.allclose(out3, ref3, atol=1e-5, rtol=1e-5), (out3, ref3)

    print("KERNEL_OK")
</pallas_src>

<mosaic_0001>
module attributes {stable_mosaic.version = 11 : i64} {
  func.func @kernel(%arg0: i32, %arg1: i32, %arg2: memref<16x128xf32, #tpu.memory_space<vmem>>, %arg3: memref<16x128xf32, #tpu.memory_space<vmem>>, %arg4: memref<8x128xf32, #tpu.memory_space<vmem>>) attributes {dimension_semantics = [#tpu.dimension_semantics<parallel>, #tpu.dimension_semantics<arbitrary>], iteration_bounds = array<i64: 1, 1>, scalar_prefetch = 0 : i64, scratch_operands = 0 : i64, tpu.core_type = #tpu.core_type<tc>, window_params = [{transform_indices = @transform_0, window_bounds = array<i64: 16, 128>}, {transform_indices = @transform_1, window_bounds = array<i64: 16, 128>}, {transform_indices = @transform_2, window_bounds = array<i64: 8, 128>}]} {
    %c0_i32 = arith.constant 0 : i32
    %0 = arith.cmpi eq, %arg1, %c0_i32 : i32
    %1 = arith.extui %0 : i1 to i32
    %c0_i32_0 = arith.constant 0 : i32
    %2 = arith.cmpi ne, %1, %c0_i32_0 : i32
    scf.if %2 {
      %cst_8 = arith.constant 0.000000e+00 : f32
      %12 = vector.broadcast %cst_8 : f32 to vector<8x128xf32>
      %c0_9 = arith.constant 0 : index
      %c0_10 = arith.constant 0 : index
      %13 = vector.load %arg4[%c0_9, %c0_10] : memref<8x128xf32, #tpu.memory_space<vmem>>, vector<8x128xf32>
      tpu.vector_store %arg4[%c0_9, %c0_10], %12 {strides = array<i32>} : memref<8x128xf32, #tpu.memory_space<vmem>>, vector<8x128xf32>,
    } else {
    }
    %c0 = arith.constant 0 : index
    %c0_1 = arith.constant 0 : index
    %3 = vector.load %arg2[%c0, %c0_1] : memref<16x128xf32, #tpu.memory_space<vmem>>, vector<16x128xf32>
    %c0_2 = arith.constant 0 : index
    %c0_3 = arith.constant 0 : index
    %4 = vector.load %arg3[%c0_2, %c0_3] : memref<16x128xf32, #tpu.memory_space<vmem>>, vector<16x128xf32>
    %5 = arith.subf %3, %4 : vector<16x128xf32>
    %6 = arith.mulf %5, %5 : vector<16x128xf32>
    %c0_4 = arith.constant 0 : index
    %c0_5 = arith.constant 0 : index
    %7 = vector.load %arg4[%c0_4, %c0_5] : memref<8x128xf32, #tpu.memory_space<vmem>>, vector<8x128xf32>
    %8 = vector.shape_cast %6 : vector<16x128xf32> to vector<2x8x128xf32>
    %cst = arith.constant dense<0.000000e+00> : vector<8x128xf32>
    %9 = vector.multi_reduction <add>, %8, %cst [0] : vector<2x8x128xf32> to vector<8x128xf32>
    %10 = arith.addf %7, %9 : vector<8x128xf32>
    %c0_6 = arith.constant 0 : index
    %c0_7 = arith.constant 0 : index
    %11 = vector.load %arg4[%c0_6, %c0_7] : memref<8x128xf32, #tpu.memory_space<vmem>>, vector<8x128xf32>
    tpu.vector_store %arg4[%c0_6, %c0_7], %10 {strides = array<i32>} : memref<8x128xf32, #tpu.memory_space<vmem>>, vector<8x128xf32>,
    return
  }
  func.func @transform_0(%arg0: i32, %arg1: i32) -> (i32, i32) {
    %c1_i32 = arith.constant 1 : i32
    %0 = arith.muli %arg0, %c1_i32 : i32
    %1 = arith.addi %0, %arg1 : i32
    %c0_i32 = arith.constant 0 : i32
    %c0_i32_0 = arith.constant 0 : i32
    return %1, %c0_i32 : i32, i32
  }
  func.func @transform_1(%arg0: i32, %arg1: i32) -> (i32, i32) {
    %c1_i32 = arith.constant 1 : i32
    %0 = arith.muli %arg0, %c1_i32 : i32
    %1 = arith.addi %0, %arg1 : i32
    %c0_i32 = arith.constant 0 : i32
    %c0_i32_0 = arith.constant 0 : i32
    return %1, %c0_i32 : i32, i32
  }
  func.func @transform_2(%arg0: i32, %arg1: i32) -> (i32, i32) {
    %c0_i32 = arith.constant 0 : i32
    %c0_i32_0 = arith.constant 0 : i32
    return %arg0, %c0_i32 : i32, i32
  }
}

</mosaic_0001>

<bundles_post_ra>
// kernel: tpu_custom_call.1
= control target key start
LH: loop header
LB: loop body
LE: loop exit
PB: predicated region body
PF: predicated region fallthrough
CT: control target
= control target key end

     0   :  { %7 = vsyncpa [#allocation3], 0  ;;  %s219_s0 = inlined_call_operand.hbm [shape: f32[16,128], index: 0, kind: input, shape index: {}]   ;;  %s220_s1 = inlined_call_operand.hbm [shape: f32[16,128], index: 1, kind: input, shape index: {}]   ;;  %s221_s2 = inlined_call_operand.hbm [shape: f32[8,128], index: 2, kind: output, shape index: {}]  }
   0x1   :  { %8 = vsyncpa [#allocation6], 0 }
   0x2   :  { %9 = vsyncpa [#allocation4], 0  ;;  %s163_s9 = smov [#allocation2]   ;;  %s91_s13 = scalar_lea.hbm %s219_s0, 256 }
   0x3   :  { %s19_s10 = sshll.u32 %s163_s9, 4  ;;  %p92_p0 = scmp.ne.s32.totalorder %s219_s0, %s91_s13  ;;  %s20_s10 = int_to_ptr.vmem [resolvable:$true] %s19_s10 }
   0x4   :  { %p95_p1 = scmp.lt.u32.totalorder %s91_s13, %s219_s0 }
   0x6   :  { %p97_p2 = pnand %p95_p1, %p92_p0 }
   0x8   :  { %100 = shalt.err (!%p97_p2)
}
   0x9   :  { %s101_s18 = scalar_lea.vmem %s20_s10, 256  ;;  %p106_p4 = scmp.lt.s32.totalorder %s20_s10, %s20_s10 }
   0xa   :  { %p102_p3 = scmp.ne.s32.totalorder %s20_s10, %s101_s18  ;;  %p107_p5 = scmp.lt.s32.totalorder %s101_s18, %s101_s18 }
   0xc   :  { %p108_p6 = por %p107_p5, %p106_p4 }
   0xe   :  { %p109_p7 = pnand %p108_p6, %p102_p3 }
  0x10   :  { %112 = shalt.err (!%p109_p7)
}
  0x11   :  { %s164_s19 = smov 128   ;;  %s165_s20 = smov 8  }
  0x12   :  { %25 = dma.hbm_to_vmem [thread:$0]  %s219_s0, 256, %s20_s10, [#allocation3], %s164_s19, %s164_s19, %s165_s20  }
  0x13   :  { %s166_s23 = smov [#allocation5]   ;;  %s113_s27 = scalar_lea.hbm %s220_s1, 256 }
  0x14   :  { %s35_s24 = sshll.u32 %s166_s23, 4  ;;  %p114_p8 = scmp.ne.s32.totalorder %s220_s1, %s113_s27  ;;  %s36_s24 = int_to_ptr.vmem [resolvable:$true] %s35_s24 }
  0x15   :  { %p117_p9 = scmp.lt.u32.totalorder %s113_s27, %s220_s1 }
  0x17   :  { %p119_p10 = pnand %p117_p9, %p114_p8 }
  0x19   :  { %122 = shalt.err (!%p119_p10)
}
  0x1a   :  { %s123_s4 = scalar_lea.vmem %s36_s24, 256  ;;  %p128_p12 = scmp.lt.s32.totalorder %s36_s24, %s36_s24 }
  0x1b   :  { %p124_p11 = scmp.ne.s32.totalorder %s36_s24, %s123_s4  ;;  %p129_p13 = scmp.lt.s32.totalorder %s123_s4, %s123_s4 }
  0x1d   :  { %p130_p0 = por %p129_p13, %p128_p12 }
  0x1f   :  { %p131_p1 = pnand %p130_p0, %p124_p11 }
  0x21   :  { %134 = shalt.err (!%p131_p1)
}
  0x22   :  { %41 = dma.hbm_to_vmem [thread:$0]  %s220_s1, 256, %s36_s24, [#allocation6], %s164_s19, %s164_s19, %s165_s20  }
  0x23   :  { %157 = dma.done.wait [#allocation3], 256  }
  0x24   :  { %158 = vsyncadd [#allocation3], 4294967040 }
  0x25   :  { %159 = dma.done.wait [#allocation6], 256  }
  0x26   :  { %160 = vsyncadd [#allocation6], 4294967040  ;;  %v57_v0 = vld [vmem:[#allocation2] sm:$0xff]  ;;  %v58_v1 = vld [vmem:[#allocation2 + $0x8] sm:$0xff]  ;;  %s167_s6 = smov [#allocation7]  }
  0x27   :  { %v59_v2 = vld [vmem:[#allocation5] sm:$0xff]  ;;  %v60_v3 = vld [vmem:[#allocation5 + $0x8] sm:$0xff]  ;;  %s75_s7 = sshll.u32 %s167_s6, 4  ;;  %s76_s7 = int_to_ptr.vmem [resolvable:$true] %s75_s7 }
  0x28   :  { %v61_v4 = vsub.f32 %v57_v0, %v59_v2  ;;  %v62_v5 = vsub.f32 %v58_v1, %v60_v3  ;;  %s135_s8 = scalar_lea.vmem %s76_s7, 128  ;;  %p140_p3 = scmp.lt.s32.totalorder %s76_s7, %s76_s7 }
  0x29   :  { %p136_p2 = scmp.ne.s32.totalorder %s76_s7, %s135_s8  ;;  %p141_p4 = scmp.lt.s32.totalorder %s135_s8, %s135_s8 }
  0x2a   :  { %v63_v6 = vmul.f32 %v61_v4, %v61_v4  ;;  %v64_v7 = vmul.f32 %v62_v5, %v62_v5 }
  0x2b   :  { %p142_p5 = por %p141_p4, %p140_p3 }
  0x2c   :  { %v66_v8 = vadd.f32 %v64_v7, %v63_v6 }
  0x2d   :  { %p143_p6 = pnand %p142_p5, %p136_p2 }
  0x2e   :  { %68 = vst [vmem:[#allocation7] sm:$0xff] %v66_v8 }
  0x2f   :  { %146 = shalt.err (!%p143_p6)
}
  0x30   :  { %s147_s10 = scalar_lea.hbm %s221_s2, 128 }
  0x31   :  { %p148_p7 = scmp.ne.s32.totalorder %s221_s2, %s147_s10  ;;  %p151_p8 = scmp.lt.u32.totalorder %s147_s10, %s221_s2 }
  0x33   :  { %p153_p9 = pnand %p151_p8, %p148_p7 }
  0x35   :  { %156 = shalt.err (!%p153_p9)
}
  0x36   :  { %78 = dma.vmem_to_hbm [thread:$0]  %s76_s7, 128, %s221_s2, [#allocation4]  }
  0x37   :  { %161 = dma.done.wait [#allocation4], 128  }
  0x38   :  { %162 = vsyncadd [#allocation4], 4294967168 }
  0x39   :  { %82 = vsyncpa [#allocation3], 1 }
  0x3a   :  { %83 = vsyncpa [#allocation6], 1 }
  0x3b   :  { %84 = vsyncpa [#allocation4], 1 }

</bundles_post_ra>
